<compile_context>
chip_gen: v6e
topology: v6e:2x2x1
jax: 0.10.0
libtpu: 0.0.40
codegen_flags: <defaults>
</compile_context>

<pallas_src>
import math
import functools

import jax
import jax.numpy as jnp
from jax.experimental import pallas as pl
from jax.experimental.pallas import tpu as pltpu


def _build_pe_table(d_model: int, max_len: int, dtype=jnp.float32) -> jnp.ndarray:
    """Deterministic sinusoidal PE table, identical to the torch __init__.

    Build once (in the compute dtype) and reuse across calls so no per-call
    cast/copy of the table is needed.
    """
    position = jnp.arange(0, max_len, dtype=jnp.float32)[:, None]            # (max_len, 1)
    div_term = jnp.exp(
        jnp.arange(0, d_model, 2, dtype=jnp.float32) * -(math.log(10000.0) / d_model)
    )                                                                        # (d_model/2,)
    ang = position * div_term                                                # (max_len, d_model/2)
    pe = jnp.zeros((max_len, d_model), dtype=jnp.float32)
    pe = pe.at[:, 0::2].set(jnp.sin(ang))
    pe = pe.at[:, 1::2].set(jnp.cos(ang))
    return pe.astype(dtype)


def _pe_add_kernel(x_ref, pe_ref, o_ref):
    # x_ref: (tb, tl), pe_ref: (1, tl) -> broadcast add on the VPU, lane-dense store.
    o_ref[...] = x_ref[...] + pe_ref[...]


@functools.lru_cache(maxsize=1)
def _vmem_budget_cap() -> int:
    """Per-generation VMEM budget cap (physical capacity minus headroom)."""
    try:
        cap = int(pltpu.get_tpu_info().vmem_capacity_bytes)
    except Exception:
        cap = 64 << 20                       # conservative (v7x-sized) fallback
    # ~48 MiB on v7x (64 MiB VMEM), ~100 MiB on v5e/v6e (128 MiB VMEM).
    return max(24 << 20, int(min(cap - (16 << 20), 0.8 * cap)))


def _round_up(x: int, m: int) -> int:
    return ((x + m - 1) // m) * m


def _choose_tiles(B: int, L: int, itemsize: int, target_bytes: int):
    """Pick (tb, tl): batch tile (sublane dim) and lane tile (multiple of 128)."""
    # Dtype-aware sublane packing: 8 rows for f32, 16 for bf16, 32 for int8/fp8.
    sub = max(8, (8 * 4) // itemsize)

    # Batch tile: full B when small / cheap, otherwise a multiple of the packed
    # sublane tile (keeps stores unmasked and avoids relayout for bf16/int8).
    if B <= sub or B * 128 * itemsize <= target_bytes:
        tb = B
    else:
        tb = max(sub, min(B, (target_bytes // (128 * itemsize)) // sub * sub))

    # Lane tile: multiple of 128 targeting ~target_bytes per x block.  Balance
    # the tiles so the last grid step is not a nearly-empty sliver.
    tl_target = max(128, (target_bytes // (tb * itemsize)) // 128 * 128)
    if tl_target >= L:
        tl = L                               # full extent: always a legal block
    else:
        n = pl.cdiv(L, tl_target)
        tl = _round_up(pl.cdiv(L, n), 128)   # <= tl_target, balanced

    # Megacore: v7x has 2 TensorCores.  Keep at least ~4 grid steps when
    # possible so both cores get work and the load/compute/store pipeline fills.
    def n_steps(tb_, tl_):
        return pl.cdiv(L, tl_) * pl.cdiv(B, tb_)

    while n_steps(tb, tl) < 4:
        if tl > 128:
            new_tl = max(128, _round_up(pl.cdiv(tl, 2), 128))
            if new_tl < tl:
                tl = new_tl
                continue
        if tb > sub:
            new_tb = max(sub, (tb // 2) // sub * sub)
            if new_tb < tb:
                tb = new_tb
                continue
        break

    return tb, tl


@functools.partial(jax.jit, static_argnames=("target_block_bytes",))
def positional_encoding(x: jnp.ndarray, pe: jnp.ndarray, *,
                        target_block_bytes: int = 8 << 20) -> jnp.ndarray:
    """Forward pass of PositionalEncoding (eval mode: dropout = identity).

    x:  (B, S, D)
    pe: (max_len, D) with max_len >= S (ideally prebuilt in x.dtype)
    """
    B, S, D = x.shape
    assert pe.shape[1] == D and pe.shape[0] >= S
    dtype = x.dtype
    itemsize = jnp.dtype(dtype).itemsize
    L = S * D

    # The table should be prebuilt/cached in the compute dtype; only cast here
    # if it is not (avoids a per-call HBM read/write of the whole table).
    pe_s = pe[:S]
    if pe_s.dtype != dtype:
        pe_s = pe_s.astype(dtype)
    pe_f = pe_s.reshape(1, L)
    x_f = x.reshape(B, L)                    # no-op view

    cap = _vmem_budget_cap()
    # Block budget such that double-buffered (x + out + padded pe) fits under cap.
    effective_target = max(1 << 20, min(int(target_block_bytes), (cap - (8 << 20)) // 4))
    tb, tl = _choose_tiles(B, L, itemsize, effective_target)

    n_lane_tiles = pl.cdiv(L, tl)
    n_batch_tiles = pl.cdiv(B, tb)

    # Honest VMEM accounting: x and out blocks are (tb, tl); the (1, tl) pe
    # block is sublane-padded to 8 x 32-bit rows; every operand is double-buffered.
    xo_buf = tb * tl * itemsize
    pe_buf = 8 * tl * 4
    vmem_needed = 2 * (2 * xo_buf + pe_buf)
    vmem_limit = int(min(cap, max(16 << 20, vmem_needed + (4 << 20))))

    cost = pl.CostEstimate(
        flops=B * L,
        transcendentals=0,
        bytes_accessed=(2 * B * L + L) * itemsize,
    )

    out_f = pl.pallas_call(
        _pe_add_kernel,
        out_shape=jax.ShapeDtypeStruct((B, L), dtype),
        grid_spec=pltpu.PrefetchScalarGridSpec(
            num_scalar_prefetch=0,
            # Batch tiles innermost: pe block index depends only on the lane
            # tile, so pe is not re-DMA'd across consecutive grid steps.
            grid=(n_lane_tiles, n_batch_tiles),
            in_specs=[
                pl.BlockSpec((tb, tl), lambda t, b: (b, t)),   # x
                pl.BlockSpec((1, tl), lambda t, b: (0, t)),    # pe (reused)
            ],
            out_specs=pl.BlockSpec((tb, tl), lambda t, b: (b, t)),
        ),
        compiler_params=pltpu.CompilerParams(
            dimension_semantics=("parallel", "parallel"),
            vmem_limit_bytes=vmem_limit,
        ),
        cost_estimate=cost,
    )(x_f, pe_f)

    return out_f.reshape(B, S, D)


if __name__ == "__main__":
    root = jax.random.PRNGKey(0)
    k1, k2, k3, k4 = jax.random.split(root, 4)

    # 1) Small shapes consistent with the module's (B, T, d_model) input; f32.
    B, S, D = 2, 8, 32
    MAX_LEN = 64          # module default is 5000; smaller table for the demo
    x = jax.random.normal(k1, (B, S, D), dtype=jnp.float32)
    pe = _build_pe_table(D, MAX_LEN, dtype=jnp.float32)
    out = jax.block_until_ready(positional_encoding(x, pe))
    ref = x + pe[None, :S, :]
    assert out.shape == (B, S, D)
    assert jnp.allclose(out, ref, atol=1e-6, rtol=1e-6), "mismatch vs reference (case 1)"

    # 2) Multi-lane-tile path: several 128-multiple lane tiles, pe reused.
    B2, S2, D2 = 2, 64, 32
    x2 = jax.random.normal(k2, (B2, S2, D2), dtype=jnp.float32)
    pe2 = _build_pe_table(D2, 128, dtype=jnp.float32)
    out2 = jax.block_until_ready(positional_encoding(x2, pe2, target_block_bytes=4096))
    ref2 = x2 + pe2[None, :S2, :]
    assert jnp.allclose(out2, ref2, atol=1e-6, rtol=1e-6), "mismatch vs reference (case 2)"

    # 3) Batch-tiled path: tb < B, batch-tile axis innermost in the grid.
    B3, S3, D3 = 16, 16, 128
    x3 = jax.random.normal(k3, (B3, S3, D3), dtype=jnp.float32)
    pe3 = _build_pe_table(D3, 32, dtype=jnp.float32)
    out3 = jax.block_until_ready(positional_encoding(x3, pe3, target_block_bytes=4096))
    ref3 = x3 + pe3[None, :S3, :]
    assert jnp.allclose(out3, ref3, atol=1e-6, rtol=1e-6), "mismatch vs reference (case 3)"

    # 4) bf16 path: dtype-aware sublane tiling, pe table prebuilt in bf16
    #    (no per-call cast), kernel adds in bf16.
    B4, S4, D4 = 2, 16, 64
    x4 = jax.random.normal(k4, (B4, S4, D4), dtype=jnp.float32).astype(jnp.bfloat16)
    pe4 = _build_pe_table(D4, 32, dtype=jnp.bfloat16)
    out4 = jax.block_until_ready(positional_encoding(x4, pe4))
    ref4 = x4 + pe4[None, :S4, :]
    assert jnp.allclose(out4.astype(jnp.float32), ref4.astype(jnp.float32),
                        atol=1e-2, rtol=1e-2), "mismatch vs reference (case 4)"

    print("KERNEL_OK")
</pallas_src>

<mosaic_0001>
module attributes {stable_mosaic.version = 11 : i64} {
  func.func @_pe_add_kernel(%arg0: i32, %arg1: i32, %arg2: memref<2x128xf32, #tpu.memory_space<vmem>>, %arg3: memref<1x128xf32, #tpu.memory_space<vmem>>, %arg4: memref<2x128xf32, #tpu.memory_space<vmem>>) attributes {dimension_semantics = [#tpu.dimension_semantics<parallel>, #tpu.dimension_semantics<parallel>], iteration_bounds = array<i64: 2, 1>, scalar_prefetch = 0 : i64, scratch_operands = 0 : i64, tpu.core_type = #tpu.core_type<tc>, window_params = [{transform_indices = @transform_0, window_bounds = array<i64: 2, 128>}, {transform_indices = @transform_1, window_bounds = array<i64: 1, 128>}, {transform_indices = @transform_2, window_bounds = array<i64: 2, 128>}]} {
    %c0 = arith.constant 0 : index
    %c0_0 = arith.constant 0 : index
    %0 = vector.load %arg2[%c0, %c0_0] : memref<2x128xf32, #tpu.memory_space<vmem>>, vector<2x128xf32>
    %c0_1 = arith.constant 0 : index
    %c0_2 = arith.constant 0 : index
    %1 = vector.load %arg3[%c0_1, %c0_2] : memref<1x128xf32, #tpu.memory_space<vmem>>, vector<1x128xf32>
    %2 = vector.broadcast %1 : vector<1x128xf32> to vector<2x128xf32>
    %3 = arith.addf %0, %2 : vector<2x128xf32>
    %c0_3 = arith.constant 0 : index
    %c0_4 = arith.constant 0 : index
    %4 = vector.load %arg4[%c0_3, %c0_4] : memref<2x128xf32, #tpu.memory_space<vmem>>, vector<2x128xf32>
    tpu.vector_store %arg4[%c0_3, %c0_4], %3 {strides = array<i32>} : memref<2x128xf32, #tpu.memory_space<vmem>>, vector<2x128xf32>,
    return
  }
  func.func @transform_0(%arg0: i32, %arg1: i32) -> (i32, i32) {
    %c0_i32 = arith.constant 0 : i32
    return %arg1, %arg0 : i32, i32
  }
  func.func @transform_1(%arg0: i32, %arg1: i32) -> (i32, i32) {
    %c0_i32 = arith.constant 0 : i32
    %c0_i32_0 = arith.constant 0 : i32
    return %c0_i32, %arg0 : i32, i32
  }
  func.func @transform_2(%arg0: i32, %arg1: i32) -> (i32, i32) {
    %c0_i32 = arith.constant 0 : i32
    return %arg1, %arg0 : i32, i32
  }
}

</mosaic_0001>

<bundles_post_ra>
// kernel: positional_encoding.1
= control target key start
LH: loop header
LB: loop body
LE: loop exit
PB: predicated region body
PF: predicated region fallthrough
CT: control target
= control target key end

     0   :  { %s364_s9 = smov 0   ;;  %s366_s10 = smov 0   ;;  %s383_s0 = inlined_call_operand.vmem [shape: f32[2,256], index: 0, kind: input, shape index: {}]   ;;  %s384_s1 = inlined_call_operand.vmem [shape: f32[1,256], index: 1, kind: input, shape index: {}]   ;;  %s385_s2 = inlined_call_operand.vmem [shape: f32[2,256], index: 2, kind: output, shape index: {}]  }
   0x1   :  { %s345_s11 = smov 0  }
   0x2 LB: > { %s24_s12 = sadd.s32 1, %s343_s10  ;;  %p295_p0 = scmp.ge.s32.totalorder %s347_s11, 1  ;;  %s347_s11 = sphi %s345_s11, %s12_s11   ;;  %s343_s10 = sphi %s366_s10, %s387_s10   ;;  %s339_s9 = sphi %s364_s9, %s386_s9  }
   0x3   : > { %p26_p1 = scmp.ge.s32.totalorder %s24_s12, 2  ;;  %p139_p2 = scmp.lt.s32.totalorder %s347_s11, 3 }
   0x5   : > { %s389_s12 = smov (%p26_p1, %s24_s12), 0  ;;  %p140_p3 = pnand %p295_p0, %p139_p2 }
   0x6   : > { %p172_p4 = scmp.lt.s32.totalorder (!%p140_p3), %s339_s9, 1 }
   0x7   : > { %143 = sbr.rel (%p140_p3) target bundleno = 19 (0x13), region = 28 }
   0xc   : > { %s391_s9 = smov (!%p172_p4, %s339_s9), 1 }
   0xd   : > { %s296_s13 = sshll.u32 %s391_s9, 1  ;;  %s180_s16 = scalar_lea.vmem %s384_s1, %s391_s9 }
   0xe   : > { %s177_s19 = scalar_lea.vmem %s383_s0, %s296_s13  ;;  %v298_v0 = vld [vmem:[%s180_s16] ss:$0 sm:$0xff]  ;;  %s188_s22 = scalar_lea.vmem %s385_s2, %s296_s13 }
   0xf   : > { %v189_v1 = vld [vmem:[%s177_s19] sm:$0x3] }
  0x10   : > { %v197_v2 = vadd.f32 %v298_v0, %v189_v1 }
  0x12   : > { %198 = vst [vmem:[%s188_s22] sm:$0x3] %v197_v2 }
  0x13 PF: > { %s12_s11 = sadd.s32 1, %s347_s11   ;;  %s386_s9 = smov %s343_s10 }
  0x14   : > { %p9_p5 = scmp.ge.s32.totalorder %s12_s11, 4   ;;  %s387_s10 = smov %s389_s12 }
  0x16   :  { %11 = sbr.rel (!%p9_p5) target bundleno = 2 (0x2), region = 61 }

</bundles_post_ra>
